<compile_context>
chip_gen: v6e
topology: v6e:2x2x1
jax: 0.10.0
libtpu: 0.0.40
codegen_flags: <defaults>
</compile_context>

<pallas_src>
import functools
import math

import jax
import jax.numpy as jnp
from jax import lax
from jax.experimental import pallas as pl
from jax.experimental.pallas import tpu as pltpu


_MASK_VALUE = -1e30   # finite large-negative; softmax statistics stay in f32


def _layernorm(x, gamma, beta, eps):
    mu = jnp.mean(x, axis=-1, keepdims=True)
    var = jnp.mean((x - mu) * (x - mu), axis=-1, keepdims=True)
    return (x - mu) * lax.rsqrt(var + eps) * gamma + beta


def _new_gelu(x):
    # NewGELU (tanh approximation) as used by GPT-2.
    c = math.sqrt(2.0 / math.pi)
    return 0.5 * x * (1.0 + jnp.tanh(c * (x + 0.044715 * x * x * x)))


def _pick_seq_tile(S, target):
    """Largest tile <= target dividing S; prefer an even tile count (megacore balance)."""
    cands = [t for t in (512, 256, 128, 64, 32, 16) if t <= target and S % t == 0]
    if not cands:
        return S                      # full-dim block is always legal
    for t in cands:
        if (S // t) % 2 == 0:
            return t
    return cands[0]


def _pick_lane_tile(N, target):
    """Tile for a lane (last-dim) axis: multiple of 128, or the full extent."""
    for t in (1024, 512, 256, 128):
        if t <= target and N % t == 0:
            return t
    return N


def _tpu_defaults():
    """(vmem_limit_bytes, default seq tile, use_bf16_exp) per TPU generation."""
    vmem_cap = None
    try:
        vmem_cap = getattr(pltpu.get_tpu_info(), "vmem_capacity_bytes", None)
    except Exception:
        vmem_cap = None
    try:
        kind = jax.devices()[0].device_kind.lower()
    except Exception:
        kind = ""
    old_gen = any(t in kind for t in ("v2", "v3", "v4", "v5"))
    # bf16 exp only where the EUP has a bf16 path (v6e / v7x); f32 elsewhere / unknown.
    use_bf16_exp = (not old_gen) and any(t in kind for t in ("v6", "v7", "7x"))
    is_small_vmem = ("7x" in kind) or ("v7" in kind) or (
        vmem_cap is not None and vmem_cap <= 64 * 1024 * 1024)
    if is_small_vmem:
        # v7x: 64 MiB physical per TC -> leave compiler/DMA headroom, smaller tiles.
        return 44 * 1024 * 1024, 256, use_bf16_exp
    # v5e / v6e: 128 MiB physical -> raise the scoped limit, bigger tiles.
    return 100 * 1024 * 1024, 512, use_bf16_exp


def _resident_spec(shape):
    """Constant-index block (weights/biases/LN): single-buffered (no wasted 2x VMEM)."""
    nd = len(shape)
    index_map = lambda *_: (0,) * nd  # noqa: E731
    try:
        return pl.BlockSpec(shape, index_map, pipeline_mode=pl.Buffered(1))
    except (TypeError, AttributeError):   # older jax without pipeline_mode / Buffered
        return pl.BlockSpec(shape, index_map)


# ----------------------------------------------------------------------------
# Kernel 1: ln_1 + c_attn  (per sequence tile) -> per-head q/k/v slabs
# ----------------------------------------------------------------------------
def _qkv_kernel(x_ref, ln1_g_ref, ln1_b_ref, w_attn_ref, b_attn_ref,
                q_ref, k_ref, v_ref, *, eps, num_heads, head_dim):
    NH, HD = num_heads, head_dim
    x = x_ref[...].astype(jnp.float32)                   # [TS, H]
    H = x.shape[-1]
    h = _layernorm(x, ln1_g_ref[...], ln1_b_ref[...], eps)
    w = w_attn_ref[...]                                  # [H, 3H] bf16
    qkv = jnp.dot(h.astype(w.dtype), w, preferred_element_type=jnp.float32)
    qkv = qkv + b_attn_ref[...]                          # f32 bias
    # 1/sqrt(head_dim) already folded into the Q columns of w_attn/b_attn (wrapper).
    # qkv layout: [q(H) | k(H) | v(H)] (same as torch .chunk(3, dim=-1)).
    # Emit (NH, TS, HD) per-head slabs directly (kills the XLA transpose between kernels).
    for hh in range(NH):
        lo = hh * HD
        q_ref[hh] = qkv[:, lo:lo + HD].astype(q_ref.dtype)
        k_ref[hh] = qkv[:, H + lo:H + lo + HD].astype(k_ref.dtype)
        v_ref[hh] = qkv[:, 2 * H + lo:2 * H + lo + HD].astype(v_ref.dtype)


# ----------------------------------------------------------------------------
# Kernel 2: causal flash attention + merged c_proj + residual
# grid = (q_tiles, kv_tiles)
# ----------------------------------------------------------------------------
def _attn_kernel(x_ref, q_ref, k_ref, v_ref, w_aproj_ref, b_aproj_ref,
                 o_ref, m_ref, l_ref, acc_ref, ohead_ref, *, use_bf16_exp):
    qi = pl.program_id(0)
    kv = pl.program_id(1)
    NH, TQ, HD = q_ref.shape
    TK = k_ref.shape[1]

    @pl.when(kv == 0)
    def _init():
        m_ref[...] = jnp.full_like(m_ref, _MASK_VALUE)
        l_ref[...] = jnp.zeros_like(l_ref)
        acc_ref[...] = jnp.zeros_like(acc_ref)

    def _accumulate(masked):
        q = q_ref[...]                                   # [NH, TQ, HD] bf16
        k = k_ref[...]                                   # [NH, TK, HD] bf16
        v = v_ref[...]                                   # [NH, TK, HD] bf16
        s = jnp.einsum("hqd,hkd->hqk", q, k,
                       preferred_element_type=jnp.float32)        # [NH, TQ, TK] f32
        if masked:  # causal mask only needed on the diagonal tile; 2D iota + broadcast
            rows = lax.broadcasted_iota(jnp.int32, (TQ, TK), 0)
            cols = lax.broadcasted_iota(jnp.int32, (TQ, TK), 1)
            s = jnp.where((cols <= rows)[None, :, :], s, _MASK_VALUE)
        m_prev = m_ref[...]
        m_new = jnp.maximum(m_prev, jnp.max(s, axis=-1, keepdims=True))
        alpha = jnp.exp(m_prev - m_new)                  # f32 (tiny)
        if use_bf16_exp:
            # bf16 exp doubles EUP throughput on v6e/v7x; row-sum accumulated in f32.
            p = jnp.exp((s - m_new).astype(jnp.bfloat16))
            p_sum = jnp.sum(p.astype(jnp.float32), axis=-1, keepdims=True)
        else:
            p_f32 = jnp.exp(s - m_new)
            p_sum = jnp.sum(p_f32, axis=-1, keepdims=True)
            p = p_f32.astype(v.dtype)
        l_ref[...] = alpha * l_ref[...] + p_sum
        acc_ref[...] = alpha * acc_ref[...] + jnp.einsum(
            "hqk,hkd->hqd", p, v, preferred_element_type=jnp.float32)
        m_ref[...] = m_new

    # Strictly-lower-triangular tiles: unmasked accumulate.
    @pl.when(kv < qi)
    def _off_diag():
        _accumulate(masked=False)

    # Diagonal tile: masked accumulate, then finalize immediately (causal => nothing
    # beyond the diagonal contributes).  Steps with kv > qi are pure no-ops with the
    # K/V index maps clamped to qi (no extra DMA traffic).
    @pl.when(kv == qi)
    def _diag_and_finalize():
        _accumulate(masked=True)
        inv_l = pl.reciprocal(l_ref[...], approx=True)   # (NH, TQ, 1) f32
        o = acc_ref[...] * inv_l                         # (NH, TQ, HD) f32
        # Merge heads into a lane-dense (TQ, H) slab -> single K=H c_proj matmul
        # (full MXU contraction depth instead of NH shallow K=HD matmuls).
        for hh in range(NH):
            ohead_ref[:, hh * HD:(hh + 1) * HD] = o[hh].astype(ohead_ref.dtype)
        w = w_aproj_ref[...]                             # [H, H] bf16
        attn = jnp.dot(ohead_ref[...], w, preferred_element_type=jnp.float32)
        attn = attn + b_aproj_ref[...]
        o_ref[...] = (attn + x_ref[...].astype(jnp.float32)).astype(o_ref.dtype)


# ----------------------------------------------------------------------------
# Kernel 3: ln_2 + MLP (c_fc -> NewGELU -> c_proj) + residual
# grid = (seq_tiles, I_tiles)   (intermediate dim tiled => MLP weights never fully resident)
# ----------------------------------------------------------------------------
def _mlp_kernel(h1_ref, ln2_g_ref, ln2_b_ref, w_fc_ref, b_fc_ref,
                w_mproj_ref, b_mproj_ref, o_ref, h2_ref, acc_ref, *, eps):
    ii = pl.program_id(1)

    @pl.when(ii == 0)
    def _init():
        h1 = h1_ref[...].astype(jnp.float32)
        h2_ref[...] = _layernorm(h1, ln2_g_ref[...], ln2_b_ref[...], eps)
        acc_ref[...] = jnp.zeros_like(acc_ref)

    w_fc = w_fc_ref[...]                                 # [H, TI] bf16
    t = jnp.dot(h2_ref[...].astype(w_fc.dtype), w_fc,
                preferred_element_type=jnp.float32) + b_fc_ref[...]
    t = _new_gelu(t)
    w_mp = w_mproj_ref[...]                              # [TI, H] bf16
    acc_ref[...] += jnp.dot(t.astype(w_mp.dtype), w_mp,
                            preferred_element_type=jnp.float32)

    @pl.when(ii == pl.num_programs(1) - 1)
    def _finalize():
        o_ref[...] = (h1_ref[...].astype(jnp.float32) + acc_ref[...]
                      + b_mproj_ref[...]).astype(o_ref.dtype)


# ----------------------------------------------------------------------------
# Wrapper
# ----------------------------------------------------------------------------
def gpt2_block(x, params, *, num_heads, head_dim, eps=1e-5, q_tile=None, i_tile=512):
    S, H = x.shape
    NH, HD = num_heads, head_dim
    assert NH * HD == H
    I = params["w_fc"].shape[1]

    vmem_limit, default_tile, use_bf16_exp = _tpu_defaults()
    if q_tile is None:
        q_tile = default_tile
    TILE = _pick_seq_tile(S, q_tile)
    n_tiles = S // TILE
    TI = _pick_lane_tile(I, i_tile)
    n_i = I // TI

    bf16 = jnp.bfloat16
    f32 = jnp.float32

    # Fold the 1/sqrt(head_dim) attention scale into the Q columns of c_attn
    # (weight AND bias) at trace time -> no in-kernel scale multiply / extra rounding.
    scale = HD ** -0.5
    col_scale = jnp.concatenate(
        [jnp.full((1, H), scale, f32), jnp.ones((1, 2 * H), f32)], axis=-1)
    w_attn = (params["w_attn"].astype(f32) * col_scale).astype(bf16)
    b_attn = params["b_attn"].astype(f32) * col_scale

    # bf16 weights: MXU-native operands, half the VMEM/HBM footprint (f32 accumulation).
    w_aproj = params["w_aproj"].astype(bf16)
    w_fc = params["w_fc"].astype(bf16)
    w_mproj = params["w_mproj"].astype(bf16)

    def cparams(sem):
        return pltpu.CompilerParams(dimension_semantics=sem,
                                    vmem_limit_bytes=vmem_limit)

    # ---- kernel 1: ln_1 + c_attn ----
    ce1 = pl.CostEstimate(
        flops=int(2 * S * H * 3 * H + 10 * S * H),
        transcendentals=int(S),
        bytes_accessed=int(S * H * 4 + H * 3 * H * 2 + 3 * H * 4
                           + 3 * S * H * 2 + 4 * H * 4),
    )
    qkv_call = pl.pallas_call(
        functools.partial(_qkv_kernel, eps=eps, num_heads=NH, head_dim=HD),
        grid_spec=pltpu.PrefetchScalarGridSpec(
            num_scalar_prefetch=0,
            grid=(n_tiles,),
            in_specs=[
                pl.BlockSpec((TILE, H), lambda i: (i, 0)),   # x
                _resident_spec((1, H)),                      # ln1_g
                _resident_spec((1, H)),                      # ln1_b
                _resident_spec((H, 3 * H)),                  # w_attn (single-buffered)
                _resident_spec((1, 3 * H)),                  # b_attn
            ],
            out_specs=(
                pl.BlockSpec((NH, TILE, HD), lambda i: (0, i, 0)),
                pl.BlockSpec((NH, TILE, HD), lambda i: (0, i, 0)),
                pl.BlockSpec((NH, TILE, HD), lambda i: (0, i, 0)),
            ),
        ),
        out_shape=(
            jax.ShapeDtypeStruct((NH, S, HD), bf16),
            jax.ShapeDtypeStruct((NH, S, HD), bf16),
            jax.ShapeDtypeStruct((NH, S, HD), bf16),
        ),
        compiler_params=cparams(("parallel",)),
        cost_estimate=ce1,
    )
    q3, k3, v3 = qkv_call(x, params["ln1_g"], params["ln1_b"], w_attn, b_attn)

    # ---- kernel 2: causal flash attention + c_proj + residual ----
    ce2 = pl.CostEstimate(
        flops=int(2 * NH * S * S * HD + 2 * S * H * H),          # ~causal QK^T + PV + c_proj
        transcendentals=int(NH * S * S // 2),
        bytes_accessed=int(2 * S * H * 4 + 3 * NH * S * HD * 2 + H * H * 2 + 2 * H * 4),
    )
    attn_call = pl.pallas_call(
        functools.partial(_attn_kernel, use_bf16_exp=use_bf16_exp),
        grid_spec=pltpu.PrefetchScalarGridSpec(
            num_scalar_prefetch=0,
            grid=(n_tiles, n_tiles),
            in_specs=[
                pl.BlockSpec((TILE, H), lambda qi, kv: (qi, 0)),            # residual x
                pl.BlockSpec((NH, TILE, HD), lambda qi, kv: (0, qi, 0)),    # q
                # clamp kv -> min(kv, qi): upper-triangular steps re-use the diagonal
                # block index, so they issue no new K/V DMA (pl.when skips the compute).
                pl.BlockSpec((NH, TILE, HD),
                             lambda qi, kv: (0, jnp.minimum(kv, qi), 0)),   # k
                pl.BlockSpec((NH, TILE, HD),
                             lambda qi, kv: (0, jnp.minimum(kv, qi), 0)),   # v
                _resident_spec((H, H)),                                     # w_aproj
                _resident_spec((1, H)),                                     # b_aproj
            ],
            out_specs=pl.BlockSpec((TILE, H), lambda qi, kv: (qi, 0)),
            scratch_shapes=[
                # (NH, TILE, 1) pads the lane dim; acceptable once the MLP is split out.
                pltpu.VMEM((NH, TILE, 1), jnp.float32),    # running max m
                pltpu.VMEM((NH, TILE, 1), jnp.float32),    # running sum l
                pltpu.VMEM((NH, TILE, HD), jnp.float32),   # output accumulator
                pltpu.VMEM((TILE, H), bf16),               # lane-dense merged-head slab
            ],
        ),
        out_shape=jax.ShapeDtypeStruct((S, H), x.dtype),
        compiler_params=cparams(("parallel", "arbitrary")),
        cost_estimate=ce2,
    )
    h1 = attn_call(x, q3, k3, v3, w_aproj, params["b_aproj"])

    # ---- kernel 3: ln_2 + MLP(NewGELU) + residual, tiled over the intermediate dim ----
    ce3 = pl.CostEstimate(
        flops=int(4 * S * H * I + 12 * S * H),
        transcendentals=int(S * I + S),
        bytes_accessed=int(2 * S * H * 4 + 2 * H * I * 2 + (I + 3 * H) * 4),
    )
    mlp_call = pl.pallas_call(
        functools.partial(_mlp_kernel, eps=eps),
        grid_spec=pltpu.PrefetchScalarGridSpec(
            num_scalar_prefetch=0,
            grid=(n_tiles, n_i),
            in_specs=[
                pl.BlockSpec((TILE, H), lambda si, ii: (si, 0)),   # h1 (ln_2 input + residual)
                _resident_spec((1, H)),                            # ln2_g
                _resident_spec((1, H)),                            # ln2_b
                pl.BlockSpec((H, TI), lambda si, ii: (0, ii)),     # w_fc tile (double-buffered)
                pl.BlockSpec((1, TI), lambda si, ii: (0, ii)),     # b_fc tile
                pl.BlockSpec((TI, H), lambda si, ii: (ii, 0)),     # w_mproj tile
                _resident_spec((1, H)),                            # b_mproj
            ],
            out_specs=pl.BlockSpec((TILE, H), lambda si, ii: (si, 0)),
            scratch_shapes=[
                pltpu.VMEM((TILE, H), jnp.float32),   # ln_2(h1), computed once per row
                pltpu.VMEM((TILE, H), jnp.float32),   # down-projection accumulator
            ],
        ),
        out_shape=jax.ShapeDtypeStruct((S, H), x.dtype),
        compiler_params=cparams(("parallel", "arbitrary")),
        cost_estimate=ce3,
    )
    return mlp_call(h1, params["ln2_g"], params["ln2_b"], w_fc, params["b_fc"],
                    w_mproj, params["b_mproj"])


# ----------------------------------------------------------------------------
# Pure-JAX f32 reference mirroring the PyTorch semantics
# ----------------------------------------------------------------------------
def _reference(x, p, *, num_heads, head_dim, eps=1e-5):
    S, H = x.shape

    def ln(h, g, b):
        mu = jnp.mean(h, -1, keepdims=True)
        var = jnp.mean((h - mu) ** 2, -1, keepdims=True)
        return (h - mu) / jnp.sqrt(var + eps) * g + b

    residual = x
    h = ln(x, p["ln1_g"], p["ln1_b"])
    qkv = h @ p["w_attn"] + p["b_attn"]
    q, k, v = jnp.split(qkv, 3, axis=-1)
    q = q.reshape(S, num_heads, head_dim).transpose(1, 0, 2)
    k = k.reshape(S, num_heads, head_dim).transpose(1, 0, 2)
    v = v.reshape(S, num_heads, head_dim).transpose(1, 0, 2)
    scores = jnp.einsum("hqd,hkd->hqk", q, k) * head_dim ** -0.5
    mask = jnp.tril(jnp.ones((S, S), bool))
    scores = jnp.where(mask[None], scores, -1e30)
    pattn = jax.nn.softmax(scores, axis=-1)
    out = jnp.einsum("hqk,hkd->hqd", pattn, v).transpose(1, 0, 2).reshape(S, H)
    attn = out @ p["w_aproj"] + p["b_aproj"]
    h = attn + residual
    residual = h
    h = ln(h, p["ln2_g"], p["ln2_b"])
    h = h @ p["w_fc"] + p["b_fc"]
    c = math.sqrt(2.0 / math.pi)
    h = 0.5 * h * (1.0 + jnp.tanh(c * (h + 0.044715 * h ** 3)))
    h = h @ p["w_mproj"] + p["b_mproj"]
    return residual + h


if __name__ == "__main__":
    # GPT2-ish toy config: hidden=32, heads=4, head_dim=8, inner=4*hidden=128
    # TODO(synk): RadixAttention's paged KV cache / decode path and tensor-parallel
    # sharding from the sglang module are not modeled; this is single-device causal prefill.
    H, NH = 32, 4
    HD = H // NH
    I = 4 * H

    key = jax.random.PRNGKey(0)
    ks = jax.random.split(key, 10)
    init = lambda k, shape: (0.02 * jax.random.normal(k, shape)).astype(jnp.float32)

    params = {
        "ln1_g": jnp.ones((1, H), jnp.float32),
        "ln1_b": jnp.zeros((1, H), jnp.float32),
        "w_attn": init(ks[0], (H, 3 * H)),
        "b_attn": init(ks[1], (1, 3 * H)),
        "w_aproj": init(ks[2], (H, H)),
        "b_aproj": init(ks[3], (1, H)),
        "ln2_g": jnp.ones((1, H), jnp.float32),
        "ln2_b": jnp.zeros((1, H), jnp.float32),
        "w_fc": init(ks[4], (H, I)),
        "b_fc": init(ks[5], (1, I)),
        "w_mproj": init(ks[6], (I, H)),
        "b_mproj": init(ks[7], (1, H)),
    }

    # Test 1: seq=8 (single tile, full-dim blocks)
    S1 = 8
    x1 = jax.random.normal(ks[8], (S1, H), jnp.float32)
    out1 = jax.block_until_ready(gpt2_block(x1, params, num_heads=NH, head_dim=HD))
    ref1 = _reference(x1, params, num_heads=NH, head_dim=HD)
    assert out1.shape == (S1, H)
    err1 = float(jnp.max(jnp.abs(out1 - ref1)))
    assert jnp.allclose(out1, ref1, atol=2e-2, rtol=2e-2), err1

    # Test 2: seq=64 with 16-row tiles -> exercises the (q_tiles x kv_tiles) causal grid,
    # clamped K/V index maps, diagonal-step finalize and the online-softmax carry.
    S2 = 64
    x2 = jax.random.normal(ks[9], (S2, H), jnp.float32)
    out2 = jax.block_until_ready(
        gpt2_block(x2, params, num_heads=NH, head_dim=HD, q_tile=16))
    ref2 = _reference(x2, params, num_heads=NH, head_dim=HD)
    assert out2.shape == (S2, H)
    err2 = float(jnp.max(jnp.abs(out2 - ref2)))
    assert jnp.allclose(out2, ref2, atol=2e-2, rtol=2e-2), err2

    print("KERNEL_OK")
</pallas_src>

<mosaic_0001>
module attributes {stable_mosaic.version = 11 : i64} {
  func.func @_qkv_kernel(%arg0: i32, %arg1: memref<8x32xf32, #tpu.memory_space<vmem>>, %arg2: memref<1x32xf32, #tpu.memory_space<vmem>>, %arg3: memref<1x32xf32, #tpu.memory_space<vmem>>, %arg4: memref<32x96xbf16, #tpu.memory_space<vmem>>, %arg5: memref<1x96xf32, #tpu.memory_space<vmem>>, %arg6: memref<4x8x8xbf16, #tpu.memory_space<vmem>>, %arg7: memref<4x8x8xbf16, #tpu.memory_space<vmem>>, %arg8: memref<4x8x8xbf16, #tpu.memory_space<vmem>>) attributes {dimension_semantics = [#tpu.dimension_semantics<parallel>], iteration_bounds = array<i64: 1>, scalar_prefetch = 0 : i64, scratch_operands = 0 : i64, tpu.core_type = #tpu.core_type<tc>, window_params = [{transform_indices = @transform_0, window_bounds = array<i64: 8, 32>}, {pipeline_mode = #tpu.pipeline_mode<synchronous>, transform_indices = @transform_1, window_bounds = array<i64: 1, 32>}, {pipeline_mode = #tpu.pipeline_mode<synchronous>, transform_indices = @transform_2, window_bounds = array<i64: 1, 32>}, {pipeline_mode = #tpu.pipeline_mode<synchronous>, transform_indices = @transform_3, window_bounds = array<i64: 32, 96>}, {pipeline_mode = #tpu.pipeline_mode<synchronous>, transform_indices = @transform_4, window_bounds = array<i64: 1, 96>}, {transform_indices = @transform_5, window_bounds = array<i64: 4, 8, 8>}, {transform_indices = @transform_6, window_bounds = array<i64: 4, 8, 8>}, {transform_indices = @transform_7, window_bounds = array<i64: 4, 8, 8>}]} {
    %c0 = arith.constant 0 : index
    %c0_0 = arith.constant 0 : index
    %0 = vector.load %arg1[%c0, %c0_0] : memref<8x32xf32, #tpu.memory_space<vmem>>, vector<8x32xf32>
    %c0_1 = arith.constant 0 : index
    %c0_2 = arith.constant 0 : index
    %1 = vector.load %arg2[%c0_1, %c0_2] : memref<1x32xf32, #tpu.memory_space<vmem>>, vector<1x32xf32>
    %c0_3 = arith.constant 0 : index
    %c0_4 = arith.constant 0 : index
    %2 = vector.load %arg3[%c0_3, %c0_4] : memref<1x32xf32, #tpu.memory_space<vmem>>, vector<1x32xf32>
    %cst = arith.constant dense<0.000000e+00> : vector<8xf32>
    %3 = vector.multi_reduction <add>, %0, %cst [1] : vector<8x32xf32> to vector<8xf32>
    %4 = vector.shape_cast %3 : vector<8xf32> to vector<8x1xf32>
    %cst_5 = arith.constant 3.200000e+01 : f32
    %5 = vector.broadcast %cst_5 : f32 to vector<8x1xf32>
    %6 = arith.divf %4, %5 : vector<8x1xf32>
    %7 = vector.broadcast %6 : vector<8x1xf32> to vector<8x32xf32>
    %8 = arith.subf %0, %7 : vector<8x32xf32>
    %9 = vector.broadcast %6 : vector<8x1xf32> to vector<8x32xf32>
    %10 = arith.subf %0, %9 : vector<8x32xf32>
    %11 = arith.mulf %8, %10 : vector<8x32xf32>
    %cst_6 = arith.constant dense<0.000000e+00> : vector<8xf32>
    %12 = vector.multi_reduction <add>, %11, %cst_6 [1] : vector<8x32xf32> to vector<8xf32>
    %13 = vector.shape_cast %12 : vector<8xf32> to vector<8x1xf32>
    %cst_7 = arith.constant 3.200000e+01 : f32
    %14 = vector.broadcast %cst_7 : f32 to vector<8x1xf32>
    %15 = arith.divf %13, %14 : vector<8x1xf32>
    %16 = vector.broadcast %6 : vector<8x1xf32> to vector<8x32xf32>
    %17 = arith.subf %0, %16 : vector<8x32xf32>
    %cst_8 = arith.constant 9.99999974E-6 : f32
    %18 = vector.broadcast %cst_8 : f32 to vector<8x1xf32>
    %19 = arith.addf %15, %18 : vector<8x1xf32>
    %20 = math.rsqrt %19 : vector<8x1xf32>
    %21 = vector.broadcast %20 : vector<8x1xf32> to vector<8x32xf32>
    %22 = arith.mulf %17, %21 : vector<8x32xf32>
    %23 = vector.broadcast %1 : vector<1x32xf32> to vector<8x32xf32>
    %24 = arith.mulf %22, %23 : vector<8x32xf32>
    %25 = vector.broadcast %2 : vector<1x32xf32> to vector<8x32xf32>
    %26 = arith.addf %24, %25 : vector<8x32xf32>
    %c0_9 = arith.constant 0 : index
    %c0_10 = arith.constant 0 : index
    %27 = vector.load %arg4[%c0_9, %c0_10] : memref<32x96xbf16, #tpu.memory_space<vmem>>, vector<32x96xbf16>
    %28 = arith.truncf %26 : vector<8x32xf32> to vector<8x32xbf16>
    %cst_11 = arith.constant dense<0.000000e+00> : vector<8x96xf32>
    %29 = tpu.matmul %28, %27, %cst_11 {dimension_numbers = #tpu.dot_dimension_numbers<[1], [0], [0], [1], [0, 0, 1, 1], [], []>} : vector<8x32xbf16>, vector<32x96xbf16>, vector<8x96xf32> -> vector<8x96xf32>
    %c0_12 = arith.constant 0 : index
    %c0_13 = arith.constant 0 : index
    %30 = vector.load %arg5[%c0_12, %c0_13] : memref<1x96xf32, #tpu.memory_space<vmem>>, vector<1x96xf32>
    %31 = vector.broadcast %30 : vector<1x96xf32> to vector<8x96xf32>
    %32 = arith.addf %29, %31 : vector<8x96xf32>
    %33 = vector.extract_strided_slice %32 {offsets = [0, 0], sizes = [8, 8], strides = [1, 1]} : vector<8x96xf32> to vector<8x8xf32>
    %34 = arith.truncf %33 : vector<8x8xf32> to vector<8x8xbf16>
    %c0_14 = arith.constant 0 : index
    %c0_15 = arith.constant 0 : index
    %c0_16 = arith.constant 0 : index
    %35 = vector.load %arg6[%c0_14, %c0_15, %c0_16] : memref<4x8x8xbf16, #tpu.memory_space<vmem>>, vector<1x8x8xbf16>
    %36 = vector.shape_cast %35 : vector<1x8x8xbf16> to vector<8x8xbf16>
    %37 = vector.shape_cast %34 : vector<8x8xbf16> to vector<1x8x8xbf16>
    tpu.vector_store %arg6[%c0_14, %c0_15, %c0_16], %37 {strides = array<i32>} : memref<4x8x8xbf16, #tpu.memory_space<vmem>>, vector<1x8x8xbf16>,
    %38 = vector.extract_strided_slice %32 {offsets = [0, 32], sizes = [8, 8], strides = [1, 1]} : vector<8x96xf32> to vector<8x8xf32>
    %39 = arith.truncf %38 : vector<8x8xf32> to vector<8x8xbf16>
    %c0_17 = arith.constant 0 : index
    %c0_18 = arith.constant 0 : index
    %c0_19 = arith.constant 0 : index
    %40 = vector.load %arg7[%c0_17, %c0_18, %c0_19] : memref<4x8x8xbf16, #tpu.memory_space<vmem>>, vector<1x8x8xbf16>
    %41 = vector.shape_cast %40 : vector<1x8x8xbf16> to vector<8x8xbf16>
    %42 = vector.shape_cast %39 : vector<8x8xbf16> to vector<1x8x8xbf16>
    tpu.vector_store %arg7[%c0_17, %c0_18, %c0_19], %42 {strides = array<i32>} : memref<4x8x8xbf16, #tpu.memory_space<vmem>>, vector<1x8x8xbf16>,
    %43 = vector.extract_strided_slice %32 {offsets = [0, 64], sizes = [8, 8], strides = [1, 1]} : vector<8x96xf32> to vector<8x8xf32>
    %44 = arith.truncf %43 : vector<8x8xf32> to vector<8x8xbf16>
    %c0_20 = arith.constant 0 : index
    %c0_21 = arith.constant 0 : index
    %c0_22 = arith.constant 0 : index
    %45 = vector.load %arg8[%c0_20, %c0_21, %c0_22] : memref<4x8x8xbf16, #tpu.memory_space<vmem>>, vector<1x8x8xbf16>
    %46 = vector.shape_cast %45 : vector<1x8x8xbf16> to vector<8x8xbf16>
    %47 = vector.shape_cast %44 : vector<8x8xbf16> to vector<1x8x8xbf16>
    tpu.vector_store %arg8[%c0_20, %c0_21, %c0_22], %47 {strides = array<i32>} : memref<4x8x8xbf16, #tpu.memory_space<vmem>>, vector<1x8x8xbf16>,
    %48 = vector.extract_strided_slice %32 {offsets = [0, 8], sizes = [8, 8], strides = [1, 1]} : vector<8x96xf32> to vector<8x8xf32>
    %49 = arith.truncf %48 : vector<8x8xf32> to vector<8x8xbf16>
    %c1 = arith.constant 1 : index
    %c0_23 = arith.constant 0 : index
    %c0_24 = arith.constant 0 : index
    %50 = vector.load %arg6[%c1, %c0_23, %c0_24] : memref<4x8x8xbf16, #tpu.memory_space<vmem>>, vector<1x8x8xbf16>
    %51 = vector.shape_cast %50 : vector<1x8x8xbf16> to vector<8x8xbf16>
    %52 = vector.shape_cast %49 : vector<8x8xbf16> to vector<1x8x8xbf16>
    tpu.vector_store %arg6[%c1, %c0_23, %c0_24], %52 {strides = array<i32>} : memref<4x8x8xbf16, #tpu.memory_space<vmem>>, vector<1x8x8xbf16>,
    %53 = vector.extract_strided_slice %32 {offsets = [0, 40], sizes = [8, 8], strides = [1, 1]} : vector<8x96xf32> to vector<8x8xf32>
    %54 = arith.truncf %53 : vector<8x8xf32> to vector<8x8xbf16>
    %c1_25 = arith.constant 1 : index
    %c0_26 = arith.constant 0 : index
    %c0_27 = arith.constant 0 : index
    %55 = vector.load %arg7[%c1_25, %c0_26, %c0_27] : memref<4x8x8xbf16, #tpu.memory_space<vmem>>, vector<1x8x8xbf16>
    %56 = vector.shape_cast %55 : vector<1x8x8xbf16> to vector<8x8xbf16>
    %57 = vector.shape_cast %54 : vector<8x8xbf16> to vector<1x8x8xbf16>
    tpu.vector_store %arg7[%c1_25, %c0_26, %c0_27], %57 {strides = array<i32>} : memref<4x8x8xbf16, #tpu.memory_space<vmem>>, vector<1x8x8xbf16>,
    %58 = vector.extract_strided_slice %32 {offsets = [0, 72], sizes = [8, 8], strides = [1, 1]} : vector<8x96xf32> to vector<8x8xf32>
    %59 = arith.truncf %58 : vector<8x8xf32> to vector<8x8xbf16>
    %c1_28 = arith.constant 1 : index
    %c0_29 = arith.constant 0 : index
    %c0_30 = arith.constant 0 : index
    %60 = vector.load %arg8[%c1_28, %c0_29, %c0_30] : memref<4x8x8xbf16, #tpu.memory_space<vmem>>, vector<1x8x8xbf16>
    %61 = vector.shape_cast %60 : vector<1x8x8xbf16> to vector<8x8xbf16>
    %62 = vector.shape_cast %59 : vector<8x8xbf16> to vector<1x8x8xbf16>
    tpu.vector_store %arg8[%c1_28, %c0_29, %c0_30], %62 {strides = array<i32>} : memref<4x8x8xbf16, #tpu.memory_space<vmem>>, vector<1x8x8xbf16>,
    %63 = vector.extract_strided_slice %32 {offsets = [0, 16], sizes = [8, 8], strides = [1, 1]} : vector<8x96xf32> to vector<8x8xf32>
    %64 = arith.truncf %63 : vector<8x8xf32> to vector<8x8xbf16>
    %c2 = arith.constant 2 : index
    %c0_31 = arith.constant 0 : index
    %c0_32 = arith.constant 0 : index
    %65 = vector.load %arg6[%c2, %c0_31, %c0_32] : memref<4x8x8xbf16, #tpu.memory_space<vmem>>, vector<1x8x8xbf16>
    %66 = vector.shape_cast %65 : vector<1x8x8xbf16> to vector<8x8xbf16>
    %67 = vector.shape_cast %64 : vector<8x8xbf16> to vector<1x8x8xbf16>
    tpu.vector_store %arg6[%c2, %c0_31, %c0_32], %67 {strides = array<i32>} : memref<4x8x8xbf16, #tpu.memory_space<vmem>>, vector<1x8x8xbf16>,
    %68 = vector.extract_strided_slice %32 {offsets = [0, 48], sizes = [8, 8], strides = [1, 1]} : vector<8x96xf32> to vector<8x8xf32>
    %69 = arith.truncf %68 : vector<8x8xf32> to vector<8x8xbf16>
    %c2_33 = arith.constant 2 : index
    %c0_34 = arith.constant 0 : index
    %c0_35 = arith.constant 0 : index
    %70 = vector.load %arg7[%c2_33, %c0_34, %c0_35] : memref<4x8x8xbf16, #tpu.memory_space<vmem>>, vector<1x8x8xbf16>
    %71 = vector.shape_cast %70 : vector<1x8x8xbf16> to vector<8x8xbf16>
    %72 = vector.shape_cast %69 : vector<8x8xbf16> to vector<1x8x8xbf16>
    tpu.vector_store %arg7[%c2_33, %c0_34, %c0_35], %72 {strides = array<i32>} : memref<4x8x8xbf16, #tpu.memory_space<vmem>>, vector<1x8x8xbf16>,
    %73 = vector.extract_strided_slice %32 {offsets = [0, 80], sizes = [8, 8], strides = [1, 1]} : vector<8x96xf32> to vector<8x8xf32>
    %74 = arith.truncf %73 : vector<8x8xf32> to vector<8x8xbf16>
    %c2_36 = arith.constant 2 : index
    %c0_37 = arith.constant 0 : index
    %c0_38 = arith.constant 0 : index
    %75 = vector.load %arg8[%c2_36, %c0_37, %c0_38] : memref<4x8x8xbf16, #tpu.memory_space<vmem>>, vector<1x8x8xbf16>
    %76 = vector.shape_cast %75 : vector<1x8x8xbf16> to vector<8x8xbf16>
    %77 = vector.shape_cast %74 : vector<8x8xbf16> to vector<1x8x8xbf16>
    tpu.vector_store %arg8[%c2_36, %c0_37, %c0_38], %77 {strides = array<i32>} : memref<4x8x8xbf16, #tpu.memory_space<vmem>>, vector<1x8x8xbf16>,
    %78 = vector.extract_strided_slice %32 {offsets = [0, 24], sizes = [8, 8], strides = [1, 1]} : vector<8x96xf32> to vector<8x8xf32>
    %79 = arith.truncf %78 : vector<8x8xf32> to vector<8x8xbf16>
    %c3 = arith.constant 3 : index
    %c0_39 = arith.constant 0 : index
    %c0_40 = arith.constant 0 : index
    %80 = vector.load %arg6[%c3, %c0_39, %c0_40] : memref<4x8x8xbf16, #tpu.memory_space<vmem>>, vector<1x8x8xbf16>
    %81 = vector.shape_cast %80 : vector<1x8x8xbf16> to vector<8x8xbf16>
    %82 = vector.shape_cast %79 : vector<8x8xbf16> to vector<1x8x8xbf16>
    tpu.vector_store %arg6[%c3, %c0_39, %c0_40], %82 {strides = array<i32>} : memref<4x8x8xbf16, #tpu.memory_space<vmem>>, vector<1x8x8xbf16>,
    %83 = vector.extract_strided_slice %32 {offsets = [0, 56], sizes = [8, 8], strides = [1, 1]} : vector<8x96xf32> to vector<8x8xf32>
    %84 = arith.truncf %83 : vector<8x8xf32> to vector<8x8xbf16>
    %c3_41 = arith.constant 3 : index
    %c0_42 = arith.constant 0 : index
    %c0_43 = arith.constant 0 : index
    %85 = vector.load %arg7[%c3_41, %c0_42, %c0_43] : memref<4x8x8xbf16, #tpu.memory_space<vmem>>, vector<1x8x8xbf16>
    %86 = vector.shape_cast %85 : vector<1x8x8xbf16> to vector<8x8xbf16>
    %87 = vector.shape_cast %84 : vector<8x8xbf16> to vector<1x8x8xbf16>
    tpu.vector_store %arg7[%c3_41, %c0_42, %c0_43], %87 {strides = array<i32>} : memref<4x8x8xbf16, #tpu.memory_space<vmem>>, vector<1x8x8xbf16>,
    %88 = vector.extract_strided_slice %32 {offsets = [0, 88], sizes = [8, 8], strides = [1, 1]} : vector<8x96xf32> to vector<8x8xf32>
    %89 = arith.truncf %88 : vector<8x8xf32> to vector<8x8xbf16>
    %c3_44 = arith.constant 3 : index
    %c0_45 = arith.constant 0 : index
    %c0_46 = arith.constant 0 : index
    %90 = vector.load %arg8[%c3_44, %c0_45, %c0_46] : memref<4x8x8xbf16, #tpu.memory_space<vmem>>, vector<1x8x8xbf16>
    %91 = vector.shape_cast %90 : vector<1x8x8xbf16> to vector<8x8xbf16>
    %92 = vector.shape_cast %89 : vector<8x8xbf16> to vector<1x8x8xbf16>
    tpu.vector_store %arg8[%c3_44, %c0_45, %c0_46], %92 {strides = array<i32>} : memref<4x8x8xbf16, #tpu.memory_space<vmem>>, vector<1x8x8xbf16>,
    return
  }
  func.func @transform_0(%arg0: i32) -> (i32, i32) {
    %c0_i32 = arith.constant 0 : i32
    %c0_i32_0 = arith.constant 0 : i32
    return %arg0, %c0_i32 : i32, i32
  }
  func.func @transform_1(%arg0: i32) -> (i32, i32) {
    %c0_i32 = arith.constant 0 : i32
    %c0_i32_0 = arith.constant 0 : i32
    %c0_i32_1 = arith.constant 0 : i32
    return %c0_i32, %c0_i32_0 : i32, i32
  }
  func.func @transform_2(%arg0: i32) -> (i32, i32) {
    %c0_i32 = arith.constant 0 : i32
    %c0_i32_0 = arith.constant 0 : i32
    %c0_i32_1 = arith.constant 0 : i32
    return %c0_i32, %c0_i32_0 : i32, i32
  }
  func.func @transform_3(%arg0: i32) -> (i32, i32) {
    %c0_i32 = arith.constant 0 : i32
    %c0_i32_0 = arith.constant 0 : i32
    %c0_i32_1 = arith.constant 0 : i32
    return %c0_i32, %c0_i32_0 : i32, i32
  }
  func.func @transform_4(%arg0: i32) -> (i32, i32) {
    %c0_i32 = arith.constant 0 : i32
    %c0_i32_0 = arith.constant 0 : i32
    %c0_i32_1 = arith.constant 0 : i32
    return %c0_i32, %c0_i32_0 : i32, i32
  }
  func.func @transform_5(%arg0: i32) -> (i32, i32, i32) {
    %c0_i32 = arith.constant 0 : i32
    %c0_i32_0 = arith.constant 0 : i32
    %c0_i32_1 = arith.constant 0 : i32
    return %c0_i32, %arg0, %c0_i32_0 : i32, i32, i32
  }
  func.func @transform_6(%arg0: i32) -> (i32, i32, i32) {
    %c0_i32 = arith.constant 0 : i32
    %c0_i32_0 = arith.constant 0 : i32
    %c0_i32_1 = arith.constant 0 : i32
    return %c0_i32, %arg0, %c0_i32_0 : i32, i32, i32
  }
  func.func @transform_7(%arg0: i32) -> (i32, i32, i32) {
    %c0_i32 = arith.constant 0 : i32
    %c0_i32_0 = arith.constant 0 : i32
    %c0_i32_1 = arith.constant 0 : i32
    return %c0_i32, %arg0, %c0_i32_0 : i32, i32, i32
  }
}

</mosaic_0001>

<bundles_post_ra>
// kernel: tpu_custom_call.1
= control target key start
LH: loop header
LB: loop body
LE: loop exit
PB: predicated region body
PF: predicated region fallthrough
CT: control target
= control target key end

     0   :  { %13 = vsyncpa [#allocation3], 0  ;;  %s520_s0 = inlined_call_operand.hbm [shape: f32[8,32], index: 0, kind: input, shape index: {}]   ;;  %s521_s1 = inlined_call_operand.vmem [shape: f32[1,32], index: 1, kind: input, shape index: {}]   ;;  %s522_s2 = inlined_call_operand.vmem [shape: f32[1,32], index: 2, kind: input, shape index: {}]   ;;  %s523_s3 = inlined_call_operand.hbm [shape: bf16[32,96], index: 3, kind: input, shape index: {}]   ;;  %s524_s4 = inlined_call_operand.vmem [shape: f32[1,96], index: 4, kind: input, shape index: {}]   ;;  %s525_s5 = inlined_call_operand.hbm [shape: bf16[4,8,8], index: 5, kind: output, shape index: {0}]   ;;  %s526_s6 = inlined_call_operand.hbm [shape: bf16[4,8,8], index: 6, kind: output, shape index: {1}]   ;;  %s527_s7 = inlined_call_operand.hbm [shape: bf16[4,8,8], index: 7, kind: output, shape index: {2}]  }
   0x1   :  { %14 = vsyncpa [#allocation6], 0 }
   0x2   :  { %15 = vsyncpa [#allocation4], 0 }
   0x3   :  { %16 = vsyncpa [#allocation9], 0  ;;  %s409_s24 = smov [#allocation2]   ;;  %s410_s26 = smov [#allocation5]  }
   0x4   :  { %s23_s25 = sshll.u32 %s409_s24, 4  ;;  %s36_s27 = sshll.u32 %s410_s26, 4  ;;  %s24_s25 = int_to_ptr.vmem [resolvable:$true] %s23_s25  ;;  %s37_s27 = int_to_ptr.vmem [resolvable:$true] %s36_s27 }
   0x5   :  { %s309_s28 = scalar_lea.vmem %s24_s25, 128  ;;  %p314_p1 = scmp.lt.s32.totalorder %s24_s25, %s24_s25 }
   0x6   :  { %p310_p0 = scmp.ne.s32.totalorder %s24_s25, %s309_s28  ;;  %p315_p2 = scmp.lt.s32.totalorder %s309_s28, %s309_s28 }
   0x8   :  { %p316_p3 = por %p315_p2, %p314_p1 }
   0xa   :  { %p317_p4 = pnand %p316_p3, %p310_p0 }
   0xc   :  { %320 = shalt.err (!%p317_p4)
}
   0xd   :  { %26 = dma.hbm_to_vmem [thread:$0]  %s520_s0, 128, %s24_s25, [#allocation3]  }
   0xe   :  { %s329_s8 = scalar_lea.vmem %s37_s27, 256  ;;  %p334_p6 = scmp.lt.s32.totalorder %s37_s27, %s37_s27 }
   0xf   :  { %p330_p5 = scmp.ne.s32.totalorder %s37_s27, %s329_s8  ;;  %p335_p7 = scmp.lt.s32.totalorder %s329_s8, %s329_s8 }
  0x11   :  { %p336_p8 = por %p335_p7, %p334_p6 }
  0x13   :  { %p337_p9 = pnand %p336_p8, %p330_p5 }
  0x15   :  { %340 = shalt.err (!%p337_p9)
}
  0x16   :  { %s411_s9 = smov 64   ;;  %s412_s10 = smov 4  }
  0x17   :  { %42 = dma.hbm_to_vmem [thread:$0]  %s523_s3, 256, %s37_s27, [#allocation6], %s411_s9, %s411_s9, %s412_s10  }
  0x18   :  { %401 = dma.done.wait [#allocation3], 128  }
  0x19   :  { %402 = vsyncadd [#allocation3], 4294967168 }
  0x1a   :  { %403 = dma.done.wait [#allocation6], 256  }
  0x1b   :  { %404 = vsyncadd [#allocation6], 4294967040  ;;  %vm55_vm0 = vcmask 261120   ;;  %v52_v0 = vld [vmem:[#allocation2] sm:$0xff]  ;;  %v297_v7 = vld [vmem:[#allocation5 + $0x8] sm:$0xff]   ;;  %v413_v8 = vmov 0.0  }
  0x1c   :  { %v56_v1 = vsel %vm55_vm0, %v52_v0, 0.0  ;;  %270 = vmatprep.subr.bf16.mxu0 %v413_v8  ;;  %vm414_vm1 = vmmov 0   ;;  %v298_v9 = vld [vmem:[#allocation5] sm:$0xff]   ;;  %v259_v14 = vld [vmem:[%s521_s1] ss:$0 sm:$0xff]  ;;  %vm152_vm2 = vcmask 60416  }
  0x1d   :  { %57 = vadd.xlane.f32.xlu0 %v56_v1  ;;  %274 = vmatprep.mubr.msk.bf16.mxu0 %vm414_vm1, %v413_v8  ;;  %v260_v16 = vld [vmem:[%s522_s2] ss:$0 sm:$0xff]  ;;  %s415_s1 = smov 80   ;;  %s416_s17 = smov 96  }
  0x1e   :  { %271 = vmatpush3.bf16.msra.mxu0 %v297_v7  ;;  %v261_v20 = vld [vmem:[%s524_s4] ss:$0 sm:$0xff]  ;;  %s417_s2 = smov 104   ;;  %s418_s18 = smov 88  }
  0x1f   :  { %272 = vmatprep.subr.bf16.mxu0 %v413_v8  ;;  %s419_s19 = smov 72   ;;  %s420_s4 = smov 120  }
  0x20   :  { %s421_s20 = smov 56   ;;  %s422_s21 = smov 112  }
  0x21   :  { %s423_s22 = smov 48   ;;  %s424_s23 = smov 40  }
  0x22   :  { %273 = vmatpush3.bf16.msra.mxu0 %v298_v9  ;;  %s425_s24 = smov [#allocation8]  }
  0x23   :  { %s227_s25 = sshll.u32 %s425_s24, 4  ;;  %s228_s25 = int_to_ptr.vmem [resolvable:$true] %s227_s25 }
  0x24   :  { %s341_s26 = scalar_lea.vmem %s228_s25, 256  ;;  %p346_p11 = scmp.lt.s32.totalorder %s228_s25, %s228_s25 }
  0x25   :  { %p342_p10 = scmp.ne.s32.totalorder %s228_s25, %s341_s26  ;;  %p347_p12 = scmp.lt.s32.totalorder %s341_s26, %s341_s26 }
  0x27   :  { %p348_p13 = por %p347_p12, %p346_p11 }
  0x29   :  { %p349_p0 = pnand %p348_p13, %p342_p10 }
  0xa6   :  { %v58_v2 = vpop.xlane.xlu0 %57 }
  0xa7   :  { %v60_v3 = vmul.f32 0.03125, %v58_v2 }
  0xa9   :  { %v61_v4 = vsub.f32 %v52_v0, %v60_v3 }
  0xab   :  { %v62_v5 = vmul.f32 %v61_v4, %v61_v4 }
  0xad   :  { %v63_v6 = vsel %vm55_vm0, %v62_v5, 0.0 }
  0xae   :  { %64 = vadd.xlane.f32.xlu0 %v63_v6 }
 0x137   :  { %v65_v10 = vpop.xlane.xlu0 %64 }
 0x138   :  { %v66_v11 = vmul.f32 0.03125, %v65_v10 }
 0x13a   :  { %v67_v12 = vadd.f32 1e-05, %v66_v11 }
 0x13c   :  { %299 = vrsqrt.f32 %v67_v12 }
 0x149   :  { %v300_v13 = vpop.eup %299 }
 0x14a   :  { %v69_v15 = vmul.f32 %v300_v13, %v61_v4 }
 0x14c   :  { %v76_v17 = vmul.f32 %v259_v14, %v69_v15 }
 0x14e   :  { %v83_v18 = vadd.f32 %v260_v16, %v76_v17 }
 0x150   :  { %v88_v19 = vpack.c.bf16 %v83_v18, %v83_v18 }
 0x152   :  { %275 = vmatmul.mubr.msk.bf16.vlgmr.msra.gmra.mxu0 %vm55_vm0, %v88_v19 }
 0x212   :  { %v145_v21 = vpop.f32.mrf.mxu0 }
 0x213   :  { %v146_v22 = vadd.f32 %v261_v20, %v145_v21 }
 0x214   :  { %v276_v23 = vpop.f32.mrf.mxu0 }
 0x215   :  { %v151_v24 = vpack.c.bf16 %v146_v22, %v146_v22 }
 0x216   :  { %v148_v25 = vpop.f32.mrf.mxu0 }
 0x217   :  { %185 = vrot.lane.b32.xlu0 %v151_v24, %s415_s1  ;;  %157 = vrot.lane.b32.xlu1 %v151_v24, %s416_s17  ;;  %153 = vst.msk [vmem:[#allocation7] sm:$0xf] %vm152_vm2, %v151_v24 }
 0x218   :  { %v277_v26 = vpop.f32.mrf.mxu0 }
 0x21b   :  { %195 = vrot.lane.b32.xlu0 %v151_v24, %s417_s2  ;;  %170 = vrot.lane.b32.xlu1 %v151_v24, %s418_s18 }
 0x21f   :  { %200 = vrot.lane.b32.xlu1 %v151_v24, %s419_s19 }
 0x223   :  { %161 = vrot.lane.b32.xlu1 %v151_v24, %s411_s9 }
 0x227   :  { %165 = vrot.lane.b32.xlu1 %v151_v24, %s420_s4 }
 0x22b   :  { %175 = vrot.lane.b32.xlu1 %v151_v24, %s421_s20 }
 0x22f   :  { %180 = vrot.lane.b32.xlu1 %v151_v24, %s422_s21 }
 0x233   :  { %190 = vrot.lane.b32.xlu1 %v151_v24, %s423_s22 }
 0x237   :  { %205 = vrot.lane.b32.xlu1 %v151_v24, %s424_s23 }
 0x289   :  { %v186_v27 = vpop.permute.xlu0 %185  ;;  %v158_v28 = vpop.permute.xlu1 %157 }
 0x28a   :  { %189 = vst.msk [vmem:[#allocation8 + $0x8] sm:$0xf] %vm152_vm2, %v186_v27  ;;  %160 = vst.msk [vmem:[#allocation8] sm:$0xf] %vm152_vm2, %v158_v28 }
 0x28d   :  { %v196_v29 = vpop.permute.xlu0 %195  ;;  %v171_v30 = vpop.permute.xlu1 %170 }
 0x28e   :  { %199 = vst.msk [vmem:[#allocation7 + $0xc] sm:$0xf] %vm152_vm2, %v196_v29  ;;  %174 = vst.msk [vmem:[#allocation8 + $0x4] sm:$0xf] %vm152_vm2, %v171_v30 }
 0x291   :  { %v201_v31 = vpop.permute.xlu1 %200 }
 0x292   :  { %204 = vst.msk [vmem:[#allocation8 + $0xc] sm:$0xf] %vm152_vm2, %v201_v31 }
 0x293   :  { %352 = shalt.err (!%p349_p0)
}
 0x294   :  { %233 = dma.vmem_to_hbm [thread:$0]  %s228_s25, 256, %s526_s6, [#allocation9], %s411_s9, %s411_s9, %s412_s10  }
 0x295   :  { %v162_v32 = vpop.permute.xlu1 %161  ;;  %s426_s29 = smov [#allocation7]  }
 0x296   :  { %164 = vst.msk [vmem:[#allocation10] sm:$0xf] %vm152_vm2, %v162_v32  ;;  %s215_s30 = sshll.u32 %s426_s29, 4  ;;  %s216_s30 = int_to_ptr.vmem [resolvable:$true] %s215_s30 }
 0x297   :  { %s361_s8 = scalar_lea.vmem %s216_s30, 256  ;;  %p366_p2 = scmp.lt.s32.totalorder %s216_s30, %s216_s30 }
 0x298   :  { %p362_p1 = scmp.ne.s32.totalorder %s216_s30, %s361_s8  ;;  %p367_p3 = scmp.lt.s32.totalorder %s361_s8, %s361_s8 }
 0x299   :  { %v166_v33 = vpop.permute.xlu1 %165 }
 0x29a   :  { %169 = vst.msk [vmem:[#allocation7 + $0x4] sm:$0xf] %vm152_vm2, %v166_v33  ;;  %p368_p4 = por %p367_p3, %p366_p2 }
 0x29c   :  { %p369_p5 = pnand %p368_p4, %p362_p1 }
 0x29d   :  { %v176_v34 = vpop.permute.xlu1 %175 }
 0x29e   :  { %179 = vst.msk [vmem:[#allocation10 + $0x4] sm:$0xf] %vm152_vm2, %v176_v34 }
 0x2a1   :  { %v181_v35 = vpop.permute.xlu1 %180 }
 0x2a2   :  { %184 = vst.msk [vmem:[#allocation7 + $0x8] sm:$0xf] %vm152_vm2, %v181_v35 }
 0x2a3   :  { %372 = shalt.err (!%p369_p5)
}
 0x2a4   :  { %221 = dma.vmem_to_hbm [thread:$0]  %s216_s30, 256, %s525_s5, [#allocation4], %s411_s9, %s411_s9, %s412_s10  }
 0x2a5   :  { %v191_v36 = vpop.permute.xlu1 %190  ;;  %s427_s12 = smov [#allocation10]  }
 0x2a6   :  { %s239_s0 = sshll.u32 %s427_s12, 4  ;;  %194 = vst.msk [vmem:[#allocation10 + $0x8] sm:$0xf] %vm152_vm2, %v191_v36  ;;  %s240_s0 = int_to_ptr.vmem [resolvable:$true] %s239_s0 }
 0x2a7   :  { %s381_s3 = scalar_lea.vmem %s240_s0, 256  ;;  %p386_p7 = scmp.lt.s32.totalorder %s240_s0, %s240_s0 }
 0x2a8   :  { %p382_p6 = scmp.ne.s32.totalorder %s240_s0, %s381_s3  ;;  %p387_p8 = scmp.lt.s32.totalorder %s381_s3, %s381_s3 }
 0x2a9   :  { %v206_v37 = vpop.permute.xlu1 %205 }
 0x2aa   :  { %209 = vst.msk [vmem:[#allocation10 + $0xc] sm:$0xf] %vm152_vm2, %v206_v37  ;;  %p388_p9 = por %p387_p8, %p386_p7 }
 0x2ac   :  { %p389_p10 = pnand %p388_p9, %p382_p6 }
 0x2ae   :  { %392 = shalt.err (!%p389_p10)
}
 0x2af   :  { %245 = dma.vmem_to_hbm [thread:$0]  %s240_s0, 256, %s527_s7, [#allocation9], %s411_s9, %s411_s9, %s412_s10  }
 0x2b0   :  { %405 = dma.done.wait [#allocation4], 256  }
 0x2b1   :  { %406 = vsyncadd [#allocation4], 4294967040 }
 0x2b2   :  { %407 = dma.done.wait [#allocation9], 512  }
 0x2b3   :  { %408 = vsyncadd [#allocation9], 4294966784 }
 0x2b4   :  { %255 = vsyncpa [#allocation3], 1 }
 0x2b5   :  { %256 = vsyncpa [#allocation6], 1 }
 0x2b6   :  { %257 = vsyncpa [#allocation4], 1 }
 0x2b7   :  { %258 = vsyncpa [#allocation9], 1 }

</bundles_post_ra>
